<compile_context>
chip_gen: v5e
topology: v5e:2x2
jax: 0.10.0
libtpu: 0.0.40
codegen_flags: <defaults>
</compile_context>

<pallas_src>
import jax
import jax.numpy as jnp
from jax.experimental import pallas as pl
from jax.experimental.pallas import tpu as pltpu

BN_EPS = 1e-5          # nn.BatchNorm1d default eps
NORM_EPS = 1e-12       # F.normalize default eps


def bnneck_normalize_kernel(x_ref, scale_ref, shift_ref, o_ref):
    """Fused inference BatchNorm1d + L2-normalize(dim=1) for one batch tile."""
    x = x_ref[...].astype(jnp.float32)                     # [tb, D]
    scale = scale_ref[...]                                 # [1, D]
    shift = shift_ref[...]                                 # [1, D]

    # BatchNorm1d (eval), folded:  y = x * scale + shift
    #   scale = gamma * rsqrt(running_var + eps)
    #   shift = beta - running_mean * scale
    y = x * scale + shift                                  # [tb, D]

    # F.normalize(y, dim=1): y / max(||y||_2, eps) == y * rsqrt(max(sum(y^2), eps^2))
    sq_sum = jnp.sum(y * y, axis=1, keepdims=True)         # [tb, 1]
    inv_norm = jax.lax.rsqrt(jnp.maximum(sq_sum, NORM_EPS * NORM_EPS))
    o_ref[...] = (y * inv_norm).astype(o_ref.dtype)


def _round_up(x, m):
    return ((x + m - 1) // m) * m


def model_eval_forward(feats, gamma, beta, running_mean, running_var,
                       *, tb=512, out_dtype=None):
    """feats: [B, D] backbone features. Returns L2-normalized BN-neck features.

    tb: batch tile (rows per grid step).  Large tiles amortize per-step
        overhead for this memory-bound kernel.  Ragged B is padded.
    """
    B, D = feats.shape
    if out_dtype is None:
        out_dtype = feats.dtype

    # Effective tile: no larger than (padded) B, multiple of 8 sublanes.
    tb_eff = min(tb, _round_up(B, 8))
    tb_eff = max(8, _round_up(tb_eff, 8))

    # Pad batch to a multiple of the tile (padded rows are sliced off at the end;
    # rows are independent, so padding never perturbs valid outputs).
    B_pad = _round_up(B, tb_eff)
    if B_pad != B:
        feats = jnp.pad(feats, ((0, B_pad - B), (0, 0)))

    # Fold BN params into scale/shift (tiny D-length XLA ops, done once).
    gamma = gamma.astype(jnp.float32)
    beta = beta.astype(jnp.float32)
    running_mean = running_mean.astype(jnp.float32)
    running_var = running_var.astype(jnp.float32)
    scale = gamma * jax.lax.rsqrt(running_var + BN_EPS)
    shift = beta - running_mean * scale
    scale2 = scale.reshape(1, D)
    shift2 = shift.reshape(1, D)

    grid = (B_pad // tb_eff,)
    # Same block index every step -> param tiles stay resident in VMEM.
    param_spec = pl.BlockSpec((1, D), lambda i: (0, 0))

    bytes_in = B_pad * D * feats.dtype.itemsize + 2 * D * 4
    bytes_out = B_pad * D * jnp.dtype(out_dtype).itemsize
    cost = pl.CostEstimate(
        flops=6 * B_pad * D,
        transcendentals=B_pad,
        bytes_accessed=bytes_in + bytes_out,
    )

    out = pl.pallas_call(
        bnneck_normalize_kernel,
        out_shape=jax.ShapeDtypeStruct((B_pad, D), out_dtype),
        grid_spec=pltpu.PrefetchScalarGridSpec(
            num_scalar_prefetch=0,
            grid=grid,
            in_specs=[
                pl.BlockSpec((tb_eff, D), lambda i: (i, 0)),   # feats tile
                param_spec,                                    # scale
                param_spec,                                    # shift
            ],
            out_specs=pl.BlockSpec((tb_eff, D), lambda i: (i, 0)),
        ),
        compiler_params=pltpu.CompilerParams(
            dimension_semantics=("parallel",),
            # ~16 MiB of double-buffered tiles; 32 MiB scoped limit is safe on
            # v5e (default 16 MiB would be tight) and well within v6e/v7x.
            vmem_limit_bytes=32 << 20,
        ),
        cost_estimate=cost,
    )(feats, scale2, shift2)

    if B_pad != B:
        out = out[:B]
    return out


def reference_eval_forward(feats, gamma, beta, running_mean, running_var):
    y = (feats - running_mean) * (gamma * jax.lax.rsqrt(running_var + BN_EPS)) + beta
    denom = jnp.maximum(jnp.linalg.norm(y, axis=1, keepdims=True), NORM_EPS)
    return y / denom


if __name__ == "__main__":
    B = 12         # small, intentionally not a multiple of the tile (tests padding)
    D = 2048       # self.base_dim = 2048

    key = jax.random.PRNGKey(0)
    k_feat, k_gamma, k_mean, k_var = jax.random.split(key, 4)

    # Deterministic synthetic "backbone output" features.
    feats = jax.random.normal(k_feat, (B, D), dtype=jnp.float32)

    # Deterministic BN-neck parameters (bias frozen to 0 per __init__).
    gamma = 1.0 + 0.1 * jax.random.normal(k_gamma, (D,), dtype=jnp.float32)
    beta = jnp.zeros((D,), dtype=jnp.float32)               # nn.init.constant_(bias, 0)
    running_mean = 0.1 * jax.random.normal(k_mean, (D,), dtype=jnp.float32)
    running_var = 1.0 + 0.05 * jax.random.uniform(k_var, (D,), dtype=jnp.float32)

    out = model_eval_forward(feats, gamma, beta, running_mean, running_var)
    out = jax.block_until_ready(out)

    ref = reference_eval_forward(feats, gamma, beta, running_mean, running_var)
    assert out.shape == (B, D)
    assert jnp.allclose(out, ref, atol=3e-5, rtol=3e-5)

    print("KERNEL_OK")
</pallas_src>

<mosaic_0001>
module attributes {stable_mosaic.version = 11 : i64} {
  func.func @bnneck_normalize_kernel(%arg0: i32, %arg1: memref<16x2048xf32, #tpu.memory_space<vmem>>, %arg2: memref<1x2048xf32, #tpu.memory_space<vmem>>, %arg3: memref<1x2048xf32, #tpu.memory_space<vmem>>, %arg4: memref<16x2048xf32, #tpu.memory_space<vmem>>) attributes {dimension_semantics = [#tpu.dimension_semantics<parallel>], iteration_bounds = array<i64: 1>, scalar_prefetch = 0 : i64, scratch_operands = 0 : i64, tpu.core_type = #tpu.core_type<tc>, window_params = [{transform_indices = @transform_0, window_bounds = array<i64: 16, 2048>}, {pipeline_mode = #tpu.pipeline_mode<synchronous>, transform_indices = @transform_1, window_bounds = array<i64: 1, 2048>}, {pipeline_mode = #tpu.pipeline_mode<synchronous>, transform_indices = @transform_2, window_bounds = array<i64: 1, 2048>}, {transform_indices = @transform_3, window_bounds = array<i64: 16, 2048>}]} {
    %c0 = arith.constant 0 : index
    %c0_0 = arith.constant 0 : index
    %0 = vector.load %arg1[%c0, %c0_0] : memref<16x2048xf32, #tpu.memory_space<vmem>>, vector<16x2048xf32>
    %c0_1 = arith.constant 0 : index
    %c0_2 = arith.constant 0 : index
    %1 = vector.load %arg2[%c0_1, %c0_2] : memref<1x2048xf32, #tpu.memory_space<vmem>>, vector<1x2048xf32>
    %c0_3 = arith.constant 0 : index
    %c0_4 = arith.constant 0 : index
    %2 = vector.load %arg3[%c0_3, %c0_4] : memref<1x2048xf32, #tpu.memory_space<vmem>>, vector<1x2048xf32>
    %3 = vector.broadcast %1 : vector<1x2048xf32> to vector<16x2048xf32>
    %4 = arith.mulf %0, %3 : vector<16x2048xf32>
    %5 = vector.broadcast %2 : vector<1x2048xf32> to vector<16x2048xf32>
    %6 = arith.addf %4, %5 : vector<16x2048xf32>
    %7 = arith.mulf %6, %6 : vector<16x2048xf32>
    %cst = arith.constant dense<0.000000e+00> : vector<16xf32>
    %8 = vector.multi_reduction <add>, %7, %cst [1] : vector<16x2048xf32> to vector<16xf32>
    %9 = vector.shape_cast %8 : vector<16xf32> to vector<16x1xf32>
    %cst_5 = arith.constant 1.000000e-24 : f32
    %10 = vector.broadcast %cst_5 : f32 to vector<16x1xf32>
    %11 = arith.maximumf %9, %10 : vector<16x1xf32>
    %12 = math.rsqrt %11 : vector<16x1xf32>
    %13 = vector.broadcast %12 : vector<16x1xf32> to vector<16x2048xf32>
    %14 = arith.mulf %6, %13 : vector<16x2048xf32>
    %c0_6 = arith.constant 0 : index
    %c0_7 = arith.constant 0 : index
    %15 = vector.load %arg4[%c0_6, %c0_7] : memref<16x2048xf32, #tpu.memory_space<vmem>>, vector<16x2048xf32>
    tpu.vector_store %arg4[%c0_6, %c0_7], %14 {strides = array<i32>} : memref<16x2048xf32, #tpu.memory_space<vmem>>, vector<16x2048xf32>,
    return
  }
  func.func @transform_0(%arg0: i32) -> (i32, i32) {
    %c0_i32 = arith.constant 0 : i32
    %c0_i32_0 = arith.constant 0 : i32
    return %arg0, %c0_i32 : i32, i32
  }
  func.func @transform_1(%arg0: i32) -> (i32, i32) {
    %c0_i32 = arith.constant 0 : i32
    %c0_i32_0 = arith.constant 0 : i32
    %c0_i32_1 = arith.constant 0 : i32
    return %c0_i32, %c0_i32_0 : i32, i32
  }
  func.func @transform_2(%arg0: i32) -> (i32, i32) {
    %c0_i32 = arith.constant 0 : i32
    %c0_i32_0 = arith.constant 0 : i32
    %c0_i32_1 = arith.constant 0 : i32
    return %c0_i32, %c0_i32_0 : i32, i32
  }
  func.func @transform_3(%arg0: i32) -> (i32, i32) {
    %c0_i32 = arith.constant 0 : i32
    %c0_i32_0 = arith.constant 0 : i32
    return %arg0, %c0_i32 : i32, i32
  }
}

</mosaic_0001>

<bundles_post_ra>
// kernel: tpu_custom_call.1
= control target key start
LH: loop header
LB: loop body
LE: loop exit
PB: predicated region body
PF: predicated region fallthrough
CT: control target
= control target key end

     0   :  { %8 = vsyncpa [#allocation3], 0  ;;  %s866_s0 = inlined_call_operand.hbm [shape: f32[16,2048], index: 0, kind: input, shape index: {}]   ;;  %s867_s1 = inlined_call_operand.hbm [shape: f32[1,2048], index: 1, kind: input, shape index: {}]   ;;  %s868_s2 = inlined_call_operand.hbm [shape: f32[1,2048], index: 2, kind: input, shape index: {}]   ;;  %s869_s3 = inlined_call_operand.hbm [shape: f32[16,2048], index: 3, kind: output, shape index: {}]  }
   0x1   :  { %9 = vsyncpa [#allocation6], 0  ;;  %s29_s14 = sshll.u32 %s867_s1, 4  ;;  %s30_s14 = int_to_ptr.hbm [resolvable:$true] %s29_s14 }
   0x2   :  { %10 = vsyncpa [#allocation4], 0  ;;  %s510_s15 = smov [#allocation5]   ;;  %s15_s19 = sshll.u32 %s866_s0, 4  ;;  %s16_s19 = int_to_ptr.hbm [resolvable:$true] %s15_s19 }
   0x3   :  { %s31_s16 = sshll.u32 %s510_s15, 4  ;;  %s511_s20 = smov [#allocation2]   ;;  %s32_s16 = int_to_ptr.vmem [resolvable:$true] %s31_s16 }
   0x4   :  { %34 = dma.hbm_to_vmem [thread:$0]  %s30_s14, 256, %s32_s16, [#allocation6]  }
   0x5   :  { %s17_s21 = sshll.u32 %s511_s20, 4  ;;  %s512_s22 = smov 2048   ;;  %s18_s21 = int_to_ptr.vmem [resolvable:$true] %s17_s21 }
   0x6   :  { %s513_s23 = smov 128   ;;  %s40_s25 = sshll.u32 %s868_s2, 4  ;;  %s41_s25 = int_to_ptr.hbm [resolvable:$true] %s40_s25 }
   0x7   :  { %23 = dma.hbm_to_vmem [thread:$0]  %s16_s19, 4096, %s18_s21, [#allocation3], %s512_s22, %s512_s22, %s513_s23  }
   0x8   :  { %s514_s26 = smov [#allocation7]  }
   0x9   :  { %s42_s27 = sshll.u32 %s514_s26, 4  ;;  %s43_s27 = int_to_ptr.vmem [resolvable:$true] %s42_s27 }
   0xa   :  { %45 = dma.hbm_to_vmem [thread:$0]  %s41_s25, 256, %s43_s27, [#allocation6]  }
   0xb   :  { %504 = dma.done.wait [#allocation3], 4096  }
   0xc   :  { %505 = vsyncadd [#allocation3], 4294963200 }
   0xd   :  { %506 = dma.done.wait [#allocation6], 512  }
   0xe   :  { %507 = vsyncadd [#allocation6], 4294966784  ;;  %v548_v0 = vld [vmem:[#allocation5] sm:$0xff]  ;;  %v59_v4 = vld [vmem:[#allocation2 + $0x8] sm:$0xff]  ;;  %s515_s0 = smov [#allocation8]   ;;  %s384_s30 = sshll.u32 %s869_s3, 4  ;;  %s385_s30 = int_to_ptr.hbm [resolvable:$true] %s384_s30 }
   0xf   :  { %v96_v1 = vperm.slane %v548_v0, 0  ;;  %v97_v2 = vperm.slane %v548_v0, 1  ;;  %v58_v3 = vld [vmem:[#allocation2] sm:$0xff]  ;;  %v552_v5 = vld [vmem:[#allocation7] sm:$0xff]  ;;  %v98_v6 = vperm.slane %v548_v0, 2  ;;  %v99_v8 = vperm.slane %v548_v0, 3 }
  0x10   :  { %v60_v7 = vld [vmem:[#allocation2 + $0x10] sm:$0xff]  ;;  %v162_v11 = vperm.slane %v552_v5, 0  ;;  %v163_v12 = vperm.slane %v552_v5, 1  ;;  %v61_v13 = vld [vmem:[#allocation2 + $0x18] sm:$0xff]  ;;  %v100_v14 = vperm.slane %v548_v0, 4  ;;  %v164_v16 = vperm.slane %v552_v5, 2 }
  0x11   :  { %v128_v9 = vmul.f32 %v96_v1, %v58_v3  ;;  %v129_v10 = vmul.f32 %v97_v2, %v59_v4  ;;  %v130_v15 = vmul.f32 %v98_v6, %v60_v7  ;;  %v62_v17 = vld [vmem:[#allocation2 + $0x20] sm:$0xff]  ;;  %v101_v18 = vperm.slane %v548_v0, 5  ;;  %v63_v19 = vld [vmem:[#allocation2 + $0x28] sm:$0xff]  ;;  %v64_v29 = vld [vmem:[#allocation2 + $0x30] sm:$0xff]  ;;  %s382_s2 = sshll.u32 %s515_s0, 4  ;;  %s383_s2 = int_to_ptr.vmem [resolvable:$true] %s382_s2 }
  0x12   :  { %v131_v20 = vmul.f32 %v99_v8, %v61_v13  ;;  %v165_v21 = vperm.slane %v552_v5, 3  ;;  %v574_v24 = vld [vmem:[#allocation5 + $0x8] sm:$0xff]  ;;  %v102_v25 = vperm.slane %v548_v0, 6  ;;  %v132_v26 = vmul.f32 %v100_v14, %v62_v17  ;;  %v65_v32 = vld [vmem:[#allocation2 + $0x38] sm:$0xff]  ;;  %v66_v41 = vld [vmem:[#allocation2 + $0x40] sm:$0xff] }
  0x13   :  { %v568_v22 = vadd.f32 %v162_v11, %v128_v9  ;;  %v572_v23 = vadd.f32 %v163_v12, %v129_v10  ;;  %v166_v27 = vperm.slane %v552_v5, 4  ;;  %v582_v28 = vadd.f32 %v164_v16, %v130_v15  ;;  %v74_v46 = vld [vmem:[#allocation2 + $0x80] sm:$0xff]  ;;  %v75_v47 = vld [vmem:[#allocation2 + $0x88] sm:$0xff]  ;;  %v609_v49 = vld [vmem:[#allocation7 + $0x8] sm:$0xff] }
  0x14   :  { %v103_v30 = vperm.slane %v548_v0, 7  ;;  %v133_v31 = vmul.f32 %v101_v18, %v63_v19  ;;  %v167_v33 = vperm.slane %v552_v5, 5  ;;  %v590_v34 = vadd.f32 %v165_v21, %v131_v20  ;;  %v67_v48 = vld [vmem:[#allocation2 + $0x48] sm:$0xff]  ;;  %v68_v54 = vld [vmem:[#allocation2 + $0x50] sm:$0xff]  ;;  %v69_v55 = vld [vmem:[#allocation2 + $0x58] sm:$0xff] }
  0x15   :  { %v226_v35 = vmul.f32 %v568_v22, %v568_v22  ;;  %v227_v36 = vmul.f32 %v572_v23, %v572_v23  ;;  %v104_v37 = vperm.slane %v574_v24, 0  ;;  %v105_v38 = vperm.slane %v574_v24, 1  ;;  %v76_v60 = vld [vmem:[#allocation2 + $0x90] sm:$0xff]  ;;  %v70_v4 = vld [vmem:[#allocation2 + $0x60] sm:$0xff]  ;;  %v77_v15 = vld [vmem:[#allocation2 + $0x98] sm:$0xff] }
  0x16   :  { %v106_v39 = vperm.slane %v574_v24, 2  ;;  %v107_v40 = vperm.slane %v574_v24, 3  ;;  %v134_v42 = vmul.f32 %v102_v25, %v64_v29  ;;  %v168_v43 = vperm.slane %v552_v5, 6  ;;  %v71_v20 = vld [vmem:[#allocation2 + $0x68] sm:$0xff] }
  0x17   :  { %v605_v44 = vadd.f32 %v166_v27, %v132_v26  ;;  %v228_v45 = vmul.f32 %v582_v28, %v582_v28  ;;  %v108_v50 = vperm.slane %v574_v24, 4  ;;  %v109_v51 = vperm.slane %v574_v24, 5  ;;  %v72_v26 = vld [vmem:[#allocation2 + $0x70] sm:$0xff]  ;;  %v83_v0 = vld [vmem:[#allocation2 + $0xc8] sm:$0xff] }
  0x18   :  { %v110_v52 = vperm.slane %v574_v24, 6  ;;  %v135_v53 = vmul.f32 %v103_v30, %v65_v32  ;;  %v169_v56 = vperm.slane %v552_v5, 7  ;;  %v619_v57 = vadd.f32 %v167_v33, %v133_v31 }
  0x19   :  { %v229_v58 = vmul.f32 %v590_v34, %v590_v34  ;;  %v258_v59 = vadd.f32 %v227_v36, %v226_v35  ;;  %v111_v61 = vperm.slane %v574_v24, 7  ;;  %v136_v62 = vmul.f32 %v104_v37, %v66_v41  ;;  %v78_v36 = vld [vmem:[#allocation2 + $0xa0] sm:$0xff] }
  0x1a   :  { %v144_v63 = vmul.f32 %v96_v1, %v74_v46  ;;  %v145_v3 = vmul.f32 %v97_v2, %v75_v47  ;;  %v170_v7 = vperm.slane %v609_v49, 0  ;;  %v629_v9 = vadd.f32 %v168_v43, %v134_v42 }
  0x1b   :  { %v230_v10 = vmul.f32 %v605_v44, %v605_v44  ;;  %v259_v13 = vadd.f32 %v258_v59, %v228_v45  ;;  %v137_v17 = vmul.f32 %v105_v38, %v67_v48  ;;  %v138_v19 = vmul.f32 %v106_v39, %v68_v54  ;;  %v79_v54 = vld [vmem:[#allocation2 + $0xa8] sm:$0xff] }
  0x1c   :  { %v139_v1 = vmul.f32 %v107_v40, %v69_v55  ;;  %v146_v2 = vmul.f32 %v98_v6, %v76_v60  ;;  %v171_v29 = vperm.slane %v609_v49, 1  ;;  %v644_v31 = vadd.f32 %v169_v56, %v135_v53 }
  0x1d   :  { %v231_v32 = vmul.f32 %v619_v57, %v619_v57  ;;  %v260_v35 = vadd.f32 %v259_v13, %v229_v58  ;;  %v140_v41 = vmul.f32 %v108_v50, %v70_v4  ;;  %v147_v42 = vmul.f32 %v99_v8, %v77_v15  ;;  %v73_v58 = vld [vmem:[#allocation2 + $0x78] sm:$0xff] }
  0x1e   :  { %v654_v6 = vadd.f32 %v162_v11, %v144_v63  ;;  %v658_v45 = vadd.f32 %v163_v12, %v145_v3  ;;  %v172_v46 = vperm.slane %v609_v49, 2  ;;  %v663_v47 = vadd.f32 %v170_v7, %v136_v62  ;;  %v80_v3 = vld [vmem:[#allocation2 + $0xb0] sm:$0xff] }
  0x1f   :  { %v232_v48 = vmul.f32 %v629_v9, %v629_v9  ;;  %v261_v53 = vadd.f32 %v260_v35, %v230_v10  ;;  %v141_v8 = vmul.f32 %v109_v51, %v71_v20  ;;  %v142_v11 = vmul.f32 %v110_v52, %v72_v26 }
  0x20   :  { %v148_v12 = vmul.f32 %v100_v14, %v78_v36  ;;  %v675_v55 = vadd.f32 %v164_v16, %v146_v2  ;;  %v173_v59 = vperm.slane %v609_v49, 3  ;;  %v680_v60 = vadd.f32 %v171_v29, %v137_v17  ;;  %v81_v2 = vld [vmem:[#allocation2 + $0xb8] sm:$0xff] }
  0x21   :  { %v233_v62 = vmul.f32 %v644_v31, %v644_v31  ;;  %v262_v63 = vadd.f32 %v261_v53, %v231_v32  ;;  %v149_v4 = vmul.f32 %v101_v18, %v79_v54  ;;  %v688_v14 = vadd.f32 %v165_v21, %v147_v42 }
  0x22   :  { %v242_v16 = vmul.f32 %v654_v6, %v654_v6  ;;  %v243_v10 = vmul.f32 %v658_v45, %v658_v45  ;;  %v174_v13 = vperm.slane %v609_v49, 4  ;;  %v697_v15 = vadd.f32 %v172_v46, %v138_v19 }
  0x23   :  { %v234_v17 = vmul.f32 %v663_v47, %v663_v47  ;;  %v263_v18 = vadd.f32 %v262_v63, %v232_v48  ;;  %v143_v21 = vmul.f32 %v111_v61, %v73_v58  ;;  %v150_v20 = vmul.f32 %v102_v25, %v80_v3  ;;  %v82_v48 = vld [vmem:[#allocation2 + $0xc0] sm:$0xff] }
  0x24   :  { %v707_v26 = vadd.f32 %v166_v27, %v148_v12  ;;  %v244_v32 = vmul.f32 %v675_v55, %v675_v55  ;;  %v175_v19 = vperm.slane %v609_v49, 5  ;;  %v714_v35 = vadd.f32 %v173_v59, %v139_v1 }
  0x25   :  { %v235_v36 = vmul.f32 %v680_v60, %v680_v60  ;;  %v264_v42 = vadd.f32 %v263_v18, %v233_v62  ;;  %v151_v25 = vmul.f32 %v103_v30, %v81_v2  ;;  %v722_v27 = vadd.f32 %v167_v33, %v149_v4 }
  0x26   :  { %v245_v53 = vmul.f32 %v688_v14, %v688_v14  ;;  %v275_v54 = vadd.f32 %v243_v10, %v242_v16  ;;  %v176_v12 = vperm.slane %v609_v49, 6  ;;  %v729_v1 = vadd.f32 %v174_v13, %v140_v41 }
  0x27   :  { %v236_v58 = vmul.f32 %v697_v15, %v697_v15  ;;  %v265_v62 = vadd.f32 %v264_v42, %v234_v17  ;;  %v152_v30 = vmul.f32 %v104_v37, %v82_v48  ;;  %v737_v33 = vadd.f32 %v168_v43, %v150_v20  ;;  %v84_v17 = vld [vmem:[#allocation2 + $0xd0] sm:$0xff]  ;;  %v85_v42 = vld [vmem:[#allocation2 + $0xd8] sm:$0xff] }
  0x28   :  { %v246_v63 = vmul.f32 %v707_v26, %v707_v26  ;;  %v276_v3 = vadd.f32 %v275_v54, %v244_v32  ;;  %v177_v4 = vperm.slane %v609_v49, 7  ;;  %v744_v41 = vadd.f32 %v175_v19, %v141_v8 }
  0x29   :  { %v237_v16 = vmul.f32 %v714_v35, %v714_v35  ;;  %v266_v10 = vadd.f32 %v265_v62, %v235_v36  ;;  %v153_v37 = vmul.f32 %v105_v38, %v83_v0  ;;  %v752_v43 = vadd.f32 %v169_v56, %v151_v25  ;;  %v87_v0 = vld [vmem:[#allocation2 + $0xe8] sm:$0xff] }
  0x2a   :  { %v247_v18 = vmul.f32 %v722_v27, %v722_v27  ;;  %v277_v2 = vadd.f32 %v276_v3, %v245_v53  ;;  %v756_v20 = vadd.f32 %v176_v12, %v142_v11  ;;  %v238_v8 = vmul.f32 %v729_v1, %v729_v1  ;;  %v86_v53 = vld [vmem:[#allocation2 + $0xe0] sm:$0xff] }
  0x2b   :  { %v267_v32 = vadd.f32 %v266_v10, %v236_v58  ;;  %v154_v36 = vmul.f32 %v106_v39, %v84_v17  ;;  %v764_v38 = vadd.f32 %v170_v7, %v152_v30  ;;  %v248_v5 = vmul.f32 %v737_v33, %v737_v33  ;;  %v88_v10 = vld [vmem:[#allocation2 + $0xf0] sm:$0xff] }
  0x2c   :  { %v278_v56 = vadd.f32 %v277_v2, %v246_v63  ;;  %v768_v48 = vadd.f32 %v177_v4, %v143_v21  ;;  %v239_v11 = vmul.f32 %v744_v41, %v744_v41  ;;  %v155_v54 = vmul.f32 %v107_v40, %v85_v42  ;;  %v89_v2 = vld [vmem:[#allocation2 + $0xf8] sm:$0xff] }
  0x2d   :  { %v268_v25 = vadd.f32 %v267_v32, %v237_v16  ;;  %v776_v39 = vadd.f32 %v171_v29, %v153_v37  ;;  %v249_v7 = vmul.f32 %v752_v43, %v752_v43  ;;  %v240_v21 = vmul.f32 %v756_v20, %v756_v20 }
  0x2e   :  { %v279_v58 = vadd.f32 %v278_v56, %v247_v18  ;;  %v156_v30 = vmul.f32 %v108_v50, %v86_v53  ;;  %v786_v63 = vadd.f32 %v172_v46, %v154_v36  ;;  %v250_v40 = vmul.f32 %v764_v38, %v764_v38 }
  0x2f   :  { %v269_v62 = vadd.f32 %v268_v25, %v238_v8  ;;  %v241_v3 = vmul.f32 %v768_v48, %v768_v48  ;;  %v157_v17 = vmul.f32 %v109_v51, %v87_v0  ;;  %v796_v37 = vadd.f32 %v173_v59, %v155_v54 }
  0x30   :  { %v280_v29 = vadd.f32 %v279_v58, %v248_v5  ;;  %v251_v50 = vmul.f32 %v776_v39, %v776_v39  ;;  %v158_v8 = vmul.f32 %v110_v52, %v88_v10  ;;  %v804_v32 = vadd.f32 %v174_v13, %v156_v30 }
  0x31   :  { %v270_v16 = vadd.f32 %v269_v62, %v239_v11  ;;  %v252_v51 = vmul.f32 %v786_v63, %v786_v63  ;;  %v159_v59 = vmul.f32 %v111_v61, %v89_v2  ;;  %v812_v5 = vadd.f32 %v175_v19, %v157_v17 }
  0x32   :  { %v281_v46 = vadd.f32 %v280_v29, %v249_v7  ;;  %v253_v56 = vmul.f32 %v796_v37, %v796_v37  ;;  %v816_v11 = vadd.f32 %v176_v12, %v158_v8  ;;  %v254_v13 = vmul.f32 %v804_v32, %v804_v32 }
  0x33   :  { %v271_v18 = vadd.f32 %v270_v16, %v240_v21  ;;  %v820_v53 = vadd.f32 %v177_v4, %v159_v59  ;;  %v255_v24 = vmul.f32 %v812_v5, %v812_v5 }
  0x34   :  { %v282_v42 = vadd.f32 %v281_v46, %v250_v40  ;;  %v256_v49 = vmul.f32 %v816_v11, %v816_v11 }
  0x35   :  { %v272_v36 = vadd.f32 %v271_v18, %v241_v3  ;;  %v257_v54 = vmul.f32 %v820_v53, %v820_v53 }
  0x36   :  { %v283_v52 = vadd.f32 %v282_v42, %v251_v50 }
  0x37   :  { %273 = vadd.xlane.f32.xlu0 %v272_v36 }
  0x38   :  { %v284_v25 = vadd.f32 %v283_v52, %v252_v51 }
  0x3a   :  { %v285_v61 = vadd.f32 %v284_v25, %v253_v56 }
  0x3c   :  { %v286_v19 = vadd.f32 %v285_v61, %v254_v13 }
  0x3e   :  { %v287_v7 = vadd.f32 %v286_v19, %v255_v24 }
  0x40   :  { %v288_v12 = vadd.f32 %v287_v7, %v256_v49 }
  0x42   :  { %v289_v58 = vadd.f32 %v288_v12, %v257_v54 }
  0x44   :  { %290 = vadd.xlane.f32.xlu0 %v289_v58 }
  0xaa   :  { %v274_v21 = vpop.xlane.xlu0 %273 }
  0xab   :  { %v292_v62 = vmax.f32 %v274_v21, 1e-24 }
  0xad   :  { %404 = vrsqrt.f32 %v292_v62  ;;  %vm300_vm1 = vweird.f32 %v292_v62 }
  0xb3   :  { %v405_v4 = vpop.eup %404 }
  0xb4   :  { %v295_v0 = vmul.f32 %v405_v4, %v292_v62  ;;  %vm301_vm0 = vweird.f32 %v405_v4 }
  0xb5   :  { %vm302_vm2 = vmor %vm300_vm1, %vm301_vm0 }
  0xb6   :  { %v296_v30 = vmul.f32 %v405_v4, %v295_v0 }
  0xb7   :  { %v291_v40 = vpop.xlane.xlu0 %290 }
  0xb8   :  { %v297_v29 = vmul.f32 0.5, %v296_v30  ;;  %v293_v3 = vmax.f32 %v291_v40, 1e-24 }
  0xba   :  { %v298_v16 = vsub.f32 1.5, %v297_v29  ;;  %406 = vrsqrt.f32 %v293_v3  ;;  %vm310_vm4 = vweird.f32 %v293_v3 }
  0xbc   :  { %v299_v10 = vmul.f32 %v405_v4, %v298_v16 }
  0xbe   :  { %v303_v17 = vsel %vm302_vm2, %v405_v4, %v299_v10 }
  0xbf   :  { %v314_v50 = vmul.f32 %v303_v17, %v568_v22  ;;  %v315_v46 = vmul.f32 %v303_v17, %v572_v23  ;;  %v316_v18 = vmul.f32 %v303_v17, %v582_v28  ;;  %v317_v8 = vmul.f32 %v303_v17, %v590_v34 }
  0xc0   :  { %v407_v2 = vpop.eup %406  ;;  %v318_v51 = vmul.f32 %v303_v17, %v605_v44  ;;  %v319_v42 = vmul.f32 %v303_v17, %v619_v57  ;;  %v320_v36 = vmul.f32 %v303_v17, %v629_v9  ;;  %v321_v56 = vmul.f32 %v303_v17, %v644_v31 }
  0xc1   :  { %346 = vst [vmem:[#allocation8] sm:$0xff] %v314_v50  ;;  %v305_v59 = vmul.f32 %v407_v2, %v293_v3  ;;  %v322_v22 = vmul.f32 %v303_v17, %v663_v47  ;;  %v323_v28 = vmul.f32 %v303_v17, %v680_v60  ;;  %v324_v34 = vmul.f32 %v303_v17, %v697_v15 }
  0xc2   :  { %347 = vst [vmem:[#allocation8 + $0x8] sm:$0xff] %v315_v46  ;;  %v325_v57 = vmul.f32 %v303_v17, %v714_v35  ;;  %v326_v9 = vmul.f32 %v303_v17, %v729_v1  ;;  %vm311_vm3 = vweird.f32 %v407_v2  ;;  %v327_v31 = vmul.f32 %v303_v17, %v744_v41 }
  0xc3   :  { %348 = vst [vmem:[#allocation8 + $0x10] sm:$0xff] %v316_v18  ;;  %v306_v23 = vmul.f32 %v407_v2, %v305_v59  ;;  %v328_v47 = vmul.f32 %v303_v17, %v756_v20  ;;  %v329_v15 = vmul.f32 %v303_v17, %v768_v48  ;;  %vm312_vm5 = vmor %vm310_vm4, %vm311_vm3 }
  0xc4   :  { %349 = vst [vmem:[#allocation8 + $0x18] sm:$0xff] %v317_v8 }
  0xc5   :  { %350 = vst [vmem:[#allocation8 + $0x20] sm:$0xff] %v318_v51  ;;  %v307_v44 = vmul.f32 0.5, %v306_v23 }
  0xc6   :  { %351 = vst [vmem:[#allocation8 + $0x28] sm:$0xff] %v319_v42 }
  0xc7   :  { %352 = vst [vmem:[#allocation8 + $0x30] sm:$0xff] %v320_v36  ;;  %v308_v52 = vsub.f32 1.5, %v307_v44 }
  0xc8   :  { %353 = vst [vmem:[#allocation8 + $0x38] sm:$0xff] %v321_v56 }
  0xc9   :  { %354 = vst [vmem:[#allocation8 + $0x40] sm:$0xff] %v322_v22  ;;  %v309_v60 = vmul.f32 %v407_v2, %v308_v52 }
  0xca   :  { %355 = vst [vmem:[#allocation8 + $0x48] sm:$0xff] %v323_v28 }
  0xcb   :  { %356 = vst [vmem:[#allocation8 + $0x50] sm:$0xff] %v324_v34  ;;  %v313_v35 = vsel %vm312_vm5, %v407_v2, %v309_v60 }
  0xcc   :  { %357 = vst [vmem:[#allocation8 + $0x58] sm:$0xff] %v325_v57  ;;  %v330_v1 = vmul.f32 %v313_v35, %v654_v6  ;;  %v331_v13 = vmul.f32 %v313_v35, %v658_v45  ;;  %v332_v41 = vmul.f32 %v313_v35, %v675_v55  ;;  %v333_v20 = vmul.f32 %v313_v35, %v688_v14 }
  0xcd   :  { %358 = vst [vmem:[#allocation8 + $0x60] sm:$0xff] %v326_v9  ;;  %v334_v25 = vmul.f32 %v313_v35, %v707_v26  ;;  %v335_v48 = vmul.f32 %v313_v35, %v722_v27  ;;  %v336_v24 = vmul.f32 %v313_v35, %v737_v33  ;;  %v337_v61 = vmul.f32 %v313_v35, %v752_v43 }
  0xce   :  { %359 = vst [vmem:[#allocation8 + $0x68] sm:$0xff] %v327_v31  ;;  %v338_v6 = vmul.f32 %v313_v35, %v764_v38  ;;  %v339_v45 = vmul.f32 %v313_v35, %v776_v39  ;;  %v340_v55 = vmul.f32 %v313_v35, %v786_v63  ;;  %v341_v14 = vmul.f32 %v313_v35, %v796_v37 }
  0xcf   :  { %360 = vst [vmem:[#allocation8 + $0x70] sm:$0xff] %v328_v47  ;;  %v342_v26 = vmul.f32 %v313_v35, %v804_v32  ;;  %v343_v27 = vmul.f32 %v313_v35, %v812_v5  ;;  %v344_v33 = vmul.f32 %v313_v35, %v816_v11  ;;  %v345_v43 = vmul.f32 %v313_v35, %v820_v53 }
  0xd0   :  { %361 = vst [vmem:[#allocation8 + $0x78] sm:$0xff] %v329_v15 }
  0xd1   :  { %362 = vst [vmem:[#allocation8 + $0x80] sm:$0xff] %v330_v1 }
  0xd2   :  { %363 = vst [vmem:[#allocation8 + $0x88] sm:$0xff] %v331_v13 }
  0xd3   :  { %364 = vst [vmem:[#allocation8 + $0x90] sm:$0xff] %v332_v41 }
  0xd4   :  { %365 = vst [vmem:[#allocation8 + $0x98] sm:$0xff] %v333_v20 }
  0xd5   :  { %366 = vst [vmem:[#allocation8 + $0xa0] sm:$0xff] %v334_v25 }
  0xd6   :  { %367 = vst [vmem:[#allocation8 + $0xa8] sm:$0xff] %v335_v48 }
  0xd7   :  { %368 = vst [vmem:[#allocation8 + $0xb0] sm:$0xff] %v336_v24 }
  0xd8   :  { %369 = vst [vmem:[#allocation8 + $0xb8] sm:$0xff] %v337_v61 }
  0xd9   :  { %370 = vst [vmem:[#allocation8 + $0xc0] sm:$0xff] %v338_v6 }
  0xda   :  { %371 = vst [vmem:[#allocation8 + $0xc8] sm:$0xff] %v339_v45 }
  0xdb   :  { %372 = vst [vmem:[#allocation8 + $0xd0] sm:$0xff] %v340_v55 }
  0xdc   :  { %373 = vst [vmem:[#allocation8 + $0xd8] sm:$0xff] %v341_v14 }
  0xdd   :  { %374 = vst [vmem:[#allocation8 + $0xe0] sm:$0xff] %v342_v26 }
  0xde   :  { %375 = vst [vmem:[#allocation8 + $0xe8] sm:$0xff] %v343_v27 }
  0xdf   :  { %376 = vst [vmem:[#allocation8 + $0xf0] sm:$0xff] %v344_v33 }
  0xe0   :  { %377 = vst [vmem:[#allocation8 + $0xf8] sm:$0xff] %v345_v43 }
  0xe1   :  { %390 = dma.vmem_to_hbm [thread:$0]  %s383_s2, 4096, %s385_s30, [#allocation4], %s512_s22, %s512_s22, %s513_s23  }
  0xe2   :  { %508 = dma.done.wait [#allocation4], 4096  }
  0xe3   :  { %509 = vsyncadd [#allocation4], 4294963200 }
  0xe4   :  { %395 = vsyncpa [#allocation3], 1 }
  0xe5   :  { %396 = vsyncpa [#allocation6], 1 }
  0xe6   :  { %397 = vsyncpa [#allocation4], 1 }

</bundles_post_ra>
